<compile_context>
chip_gen: v7x
topology: tpu7x:2x2x1
jax: 0.10.0
libtpu: 0.0.40
codegen_flags: <defaults>
</compile_context>

<pallas_src>
import jax
import jax.numpy as jnp
import numpy as np
from jax.experimental import pallas as pl
from jax.experimental.pallas import tpu as pltpu


# ----------------------------------------------------------------------------
# Kernel factory: one grid step handles a (Bn, C, HW) batch block.
# ----------------------------------------------------------------------------
def _make_kernel(Bn, C, HW, HID, FB, chunks):
    inv_hw = 1.0 / float(HW)

    def kernel(x_ref, wgT_ref, bg_ref, w1t_ref, scale_ref, shift_ref,
               w2t_ref, b2_ref, out_ref, act_ref):
        cd = x_ref.dtype  # activation compute dtype (f32 or bf16)

        # Hoisted constants (per grid step, outside the per-sample loop).
        # eye(C) implements a cheap (C,1)->(1,C) "vector transpose" via a VPU
        # multiply + sublane reduce, keeping the gate fold off the MXU FIFO.
        rows = jax.lax.broadcasted_iota(jnp.int32, (C, C), 0)
        cols = jax.lax.broadcasted_iota(jnp.int32, (C, C), 1)
        eye = (rows == cols).astype(jnp.float32)

        for b in range(Bn):  # static unroll over the batch block
            # ---- gate head (kept in f32; hard-gate boundary is sensitive) ---
            pooled = jnp.zeros((C, 1), jnp.float32)
            for (c0, cs) in chunks:
                xc = x_ref[b, :, c0:c0 + cs].astype(jnp.float32)     # (C, cs)
                pooled = pooled + jnp.sum(xc, axis=1, keepdims=True)
            pooled = pooled * inv_hw                                  # (C, 1)

            logits = jnp.dot(wgT_ref[...], pooled,
                             preferred_element_type=jnp.float32) + bg_ref[...]
            act_col = jax.nn.sigmoid(logits)                          # (C, 1)

            # (C,1) column -> (1,C) row (lane-dense) for both the act output
            # and the broadcast gate fold.
            act_row = jnp.sum(act_col * eye, axis=0, keepdims=True)   # (1, C)
            act_ref[b, :, :] = act_row.astype(act_ref.dtype)
            gate_row = jnp.where(act_row >= 0.5, 1.0, 0.0).astype(cd)  # hard gate

            # ---- fold gate into conv1 weight: VPU broadcast multiply --------
            w1g = w1t_ref[...] * gate_row                             # (HID, C)

            # ---- conv1 -> folded BN -> ReLU -> conv2 (+bias), HW-chunked ----
            for (c0, cs) in chunks:
                xc = x_ref[b, :, c0:c0 + cs]                          # (C, cs)
                h = jnp.dot(w1g, xc,
                            preferred_element_type=jnp.float32)       # (HID, cs)
                h = jnp.maximum(h * scale_ref[...] + shift_ref[...], 0.0)
                o = jnp.dot(w2t_ref[...], h,
                            preferred_element_type=jnp.float32) + b2_ref[...]
                out_ref[b, :, c0:c0 + cs] = o.astype(out_ref.dtype)   # (FB, cs)

    return kernel


# ----------------------------------------------------------------------------
# Wrapper
# ----------------------------------------------------------------------------
def beta_fb_decoder(x_nchw, params, *, activation_dtype=None,
                    max_lane_chunk=8192, target_step_bytes=1 << 20,
                    vmem_limit_bytes=48 * 1024 * 1024):
    wg, bg, w1, bn_scale, bn_shift, w2, b2 = params
    N, C, H, W = x_nchw.shape
    HW = H * W
    HID = w1.shape[1]
    FB = w2.shape[1]

    cd = jnp.dtype(activation_dtype) if activation_dtype is not None \
        else jnp.dtype(x_nchw.dtype)
    itemsize = cd.itemsize

    # NCHW -> [N, C, HW] is a free reshape (no transpose of the activation).
    # In production the activation should already arrive as bf16; the cast
    # here is only for the demo wrapper.
    x = x_nchw.reshape(N, C, HW).astype(cd)

    # --- batch blocking: keep each grid-step input DMA >= ~1 MiB -------------
    bytes_per_sample = C * HW * itemsize
    max_bn = max(1, int(target_step_bytes // max(bytes_per_sample, 1)))
    Bn = 1
    for d in range(1, N + 1):
        if N % d == 0 and d <= max_bn:
            Bn = d
    # TODO(synk): on v7x with grid == 1 (e.g. N == 1 deployment) one TensorCore
    # idles; precomputing the gate outside the kernel would allow a parallel
    # HW-halves grid axis instead.

    # --- lane (HW) chunking of the conv chain ---------------------------------
    if HW <= max_lane_chunk:
        chunks = ((0, HW),)
    else:
        chunks = tuple((c, min(max_lane_chunk, HW - c))
                       for c in range(0, HW, max_lane_chunk))
    max_cs = max(cs for _, cs in chunks)

    # --- VMEM residency guard (resident-per-block design) ---------------------
    weights_bytes = 4 * (C * C + C + 2 * HID + FB * HID + FB) + itemsize * HID * C
    resident_bytes = (2 * Bn * C * HW * itemsize      # x block (double buffered)
                      + 2 * Bn * FB * HW * 4          # out block (double buffered)
                      + 2 * Bn * C * 4                # act block
                      + (C + HID + FB) * max_cs * 4   # per-chunk temporaries
                      + 2 * weights_bytes)
    if resident_bytes > int(0.85 * vmem_limit_bytes):
        # TODO(synk): add a two-pass spatially-tiled path (partial pooled sums
        # carried across a spatial grid axis) for very large H*W.
        raise ValueError(
            f"BetaFBDecoder Pallas kernel: estimated VMEM footprint "
            f"{resident_bytes} B exceeds the scoped limit {vmem_limit_bytes} B; "
            f"reduce the image size or add spatial tiling of x.")

    kernel = _make_kernel(Bn, C, HW, HID, FB, chunks)

    cost = pl.CostEstimate(
        flops=N * (2 * HW * (HID * C + FB * HID) + 2 * C * C + 2 * C * HW),
        transcendentals=N * C,
        bytes_accessed=(N * C * HW * itemsize + N * FB * HW * 4 + N * C * 4
                        + weights_bytes))

    out, act = pl.pallas_call(
        kernel,
        out_shape=(jax.ShapeDtypeStruct((N, FB, HW), jnp.float32),
                   jax.ShapeDtypeStruct((N, 1, C), jnp.float32)),
        grid=(N // Bn,),
        in_specs=[
            pl.BlockSpec((Bn, C, HW), lambda n: (n, 0, 0)),   # activation (read once)
            pl.BlockSpec((C, C), lambda n: (0, 0)),           # gate FC weight (transposed, f32)
            pl.BlockSpec((C, 1), lambda n: (0, 0)),           # gate FC bias (column, f32)
            pl.BlockSpec((HID, C), lambda n: (0, 0)),         # conv1 weight (transposed, compute dtype)
            pl.BlockSpec((HID, 1), lambda n: (0, 0)),         # folded BN scale (f32)
            pl.BlockSpec((HID, 1), lambda n: (0, 0)),         # folded BN shift (f32)
            pl.BlockSpec((FB, HID), lambda n: (0, 0)),        # conv2 weight (transposed, f32)
            pl.BlockSpec((FB, 1), lambda n: (0, 0)),          # conv2 bias (f32)
        ],
        out_specs=(
            pl.BlockSpec((Bn, FB, HW), lambda n: (n, 0, 0)),  # lane-dense output
            pl.BlockSpec((Bn, 1, C), lambda n: (n, 0, 0)),    # lane-dense act rows
        ),
        compiler_params=pltpu.CompilerParams(
            dimension_semantics=("parallel",),                # shard batch blocks across TCs
            vmem_limit_bytes=vmem_limit_bytes),
        cost_estimate=cost,
    )(x,
      wg.T.astype(jnp.float32),
      bg.reshape(C, 1).astype(jnp.float32),
      w1.T.astype(cd),
      bn_scale.reshape(HID, 1).astype(jnp.float32),
      bn_shift.reshape(HID, 1).astype(jnp.float32),
      w2.T.astype(jnp.float32),
      b2.reshape(FB, 1).astype(jnp.float32))

    # [N, FB, HW] is already channel-major -> free reshape to NCHW.
    return out.reshape(N, FB, H, W), act.reshape(N, C)


# ----------------------------------------------------------------------------
# Pure-JAX reference (same math, no Pallas) for a correctness check.
# ----------------------------------------------------------------------------
def beta_fb_decoder_ref(x_nchw, params):
    wg, bg, w1, bn_scale, bn_shift, w2, b2 = params
    N, C, H, W = x_nchw.shape
    pooled = x_nchw.mean(axis=(2, 3))                         # (N, C)
    act = jax.nn.sigmoid(pooled @ wg + bg)                    # (N, C)
    gate = (act >= 0.5).astype(jnp.float32)
    xg = x_nchw * gate[:, :, None, None]
    xf = jnp.transpose(xg, (0, 2, 3, 1)).reshape(N, H * W, C)
    h = jnp.maximum(xf @ w1 * bn_scale + bn_shift, 0.0)
    out = h @ w2 + b2
    return jnp.transpose(out.reshape(N, H, W, -1), (0, 3, 1, 2)), act


if __name__ == "__main__":
    # Small shapes consistent with the module: hbody_cls input channels,
    # fbody_cls output channels, 24 hidden.
    N, hbody_cls, H, W = 2, 20, 16, 16
    fbody_cls = 3
    hidden = 24
    eps = 1e-5

    key = jax.random.PRNGKey(0)
    ks = jax.random.split(key, 9)

    x = jax.random.normal(ks[0], (N, hbody_cls, H, W), jnp.float32)

    # GatingBlock FC params (in_dim -> out_dim, here C -> C).
    wg = 0.2 * jax.random.normal(ks[1], (hbody_cls, hbody_cls), jnp.float32)
    bg = 0.1 * jax.random.normal(ks[2], (hbody_cls,), jnp.float32)

    # conv1[0]: Conv2d(hbody_cls, 24, 1x1, bias=False) -> weight (24, C, 1, 1).
    w1 = 0.2 * jax.random.normal(ks[3], (hbody_cls, hidden), jnp.float32)   # (C, 24) = W.T
    # conv1[1]: InPlaceABNSync(24, activation='none'), eval mode -> scale/shift.
    gamma = 1.0 + 0.05 * jax.random.normal(ks[4], (hidden,), jnp.float32)
    beta = 0.05 * jax.random.normal(ks[5], (hidden,), jnp.float32)
    run_mean = 0.1 * jax.random.normal(ks[6], (hidden,), jnp.float32)
    run_var = jnp.abs(1.0 + 0.1 * jax.random.normal(ks[7], (hidden,), jnp.float32))
    bn_scale = gamma / jnp.sqrt(run_var + eps)
    bn_shift = beta - run_mean * bn_scale
    # conv1[3]: Conv2d(24, fbody_cls, 1x1, bias=True).
    w2 = 0.2 * jax.random.normal(ks[8], (hidden, fbody_cls), jnp.float32)   # (24, FB) = W.T
    b2 = 0.01 * jnp.arange(fbody_cls, dtype=jnp.float32)

    params = (wg, bg, w1, bn_scale, bn_shift, w2, b2)

    # --- f32 path: strict correctness vs the pure-JAX reference --------------
    out, act_bfb = beta_fb_decoder(x, params)
    out = jax.block_until_ready(out)
    act_bfb = jax.block_until_ready(act_bfb)

    out_ref, act_ref = beta_fb_decoder_ref(x, params)
    np.testing.assert_allclose(np.asarray(out), np.asarray(out_ref),
                               rtol=1e-5, atol=1e-5)
    np.testing.assert_allclose(np.asarray(act_bfb), np.asarray(act_ref),
                               rtol=1e-5, atol=1e-5)
    assert out.shape == (N, fbody_cls, H, W)
    assert act_bfb.shape == (N, hbody_cls)

    # --- bf16 activation path (the big HBM-roofline win) ---------------------
    # No strict numeric assert: the hard gate (act >= 0.5) is discontinuous and
    # this synthetic data has logits near 0, so bf16 pooled means can legally
    # flip channels.  We only check the path runs cleanly and is well-formed.
    out_bf, act_bf = beta_fb_decoder(x, params, activation_dtype=jnp.bfloat16)
    out_bf = jax.block_until_ready(out_bf)
    act_bf = jax.block_until_ready(act_bf)
    assert out_bf.shape == (N, fbody_cls, H, W)
    assert act_bf.shape == (N, hbody_cls)
    assert np.all(np.isfinite(np.asarray(out_bf)))
    a_bf = np.asarray(act_bf)
    assert np.all((a_bf >= 0.0) & (a_bf <= 1.0))

    print("KERNEL_OK")
</pallas_src>

<mosaic_0001>
module attributes {stable_mosaic.version = 11 : i64} {
  func.func @kernel(%arg0: i32, %arg1: memref<2x20x256xf32, #tpu.memory_space<vmem>>, %arg2: memref<20x20xf32, #tpu.memory_space<vmem>>, %arg3: memref<20x1xf32, #tpu.memory_space<vmem>>, %arg4: memref<24x20xf32, #tpu.memory_space<vmem>>, %arg5: memref<24x1xf32, #tpu.memory_space<vmem>>, %arg6: memref<24x1xf32, #tpu.memory_space<vmem>>, %arg7: memref<3x24xf32, #tpu.memory_space<vmem>>, %arg8: memref<3x1xf32, #tpu.memory_space<vmem>>, %arg9: memref<2x3x256xf32, #tpu.memory_space<vmem>>, %arg10: memref<2x1x20xf32, #tpu.memory_space<vmem>>) attributes {dimension_semantics = [#tpu.dimension_semantics<parallel>], iteration_bounds = array<i64: 1>, scalar_prefetch = 0 : i64, scratch_operands = 0 : i64, tpu.core_type = #tpu.core_type<tc>, window_params = [{transform_indices = @transform_0, window_bounds = array<i64: 2, 20, 256>}, {pipeline_mode = #tpu.pipeline_mode<synchronous>, transform_indices = @transform_1, window_bounds = array<i64: 20, 20>}, {pipeline_mode = #tpu.pipeline_mode<synchronous>, transform_indices = @transform_2, window_bounds = array<i64: 20, 1>}, {pipeline_mode = #tpu.pipeline_mode<synchronous>, transform_indices = @transform_3, window_bounds = array<i64: 24, 20>}, {pipeline_mode = #tpu.pipeline_mode<synchronous>, transform_indices = @transform_4, window_bounds = array<i64: 24, 1>}, {pipeline_mode = #tpu.pipeline_mode<synchronous>, transform_indices = @transform_5, window_bounds = array<i64: 24, 1>}, {pipeline_mode = #tpu.pipeline_mode<synchronous>, transform_indices = @transform_6, window_bounds = array<i64: 3, 24>}, {pipeline_mode = #tpu.pipeline_mode<synchronous>, transform_indices = @transform_7, window_bounds = array<i64: 3, 1>}, {transform_indices = @transform_8, window_bounds = array<i64: 2, 3, 256>}, {transform_indices = @transform_9, window_bounds = array<i64: 2, 1, 20>}]} {
    %0 = tpu.iota {dimensions = array<i32: 0>} : vector<20x20xi32>
    %1 = tpu.iota {dimensions = array<i32: 1>} : vector<20x20xi32>
    %2 = arith.cmpi eq, %0, %1 : vector<20x20xi32>
    %3 = arith.extui %2 : vector<20x20xi1> to vector<20x20xi32>
    %4 = arith.sitofp %3 : vector<20x20xi32> to vector<20x20xf32>
    %cst = arith.constant 0.000000e+00 : f32
    %5 = vector.broadcast %cst : f32 to vector<20x1xf32>
    %c0 = arith.constant 0 : index
    %c0_0 = arith.constant 0 : index
    %c0_1 = arith.constant 0 : index
    %6 = vector.load %arg1[%c0, %c0_0, %c0_1] : memref<2x20x256xf32, #tpu.memory_space<vmem>>, vector<1x20x256xf32>
    %7 = vector.shape_cast %6 : vector<1x20x256xf32> to vector<20x256xf32>
    %cst_2 = arith.constant dense<0.000000e+00> : vector<20xf32>
    %8 = vector.multi_reduction <add>, %7, %cst_2 [1] : vector<20x256xf32> to vector<20xf32>
    %9 = vector.shape_cast %8 : vector<20xf32> to vector<20x1xf32>
    %10 = arith.addf %5, %9 : vector<20x1xf32>
    %cst_3 = arith.constant 3.906250e-03 : f32
    %11 = vector.broadcast %cst_3 : f32 to vector<20x1xf32>
    %12 = arith.mulf %10, %11 : vector<20x1xf32>
    %c0_4 = arith.constant 0 : index
    %c0_5 = arith.constant 0 : index
    %13 = vector.load %arg2[%c0_4, %c0_5] : memref<20x20xf32, #tpu.memory_space<vmem>>, vector<20x20xf32>
    %cst_6 = arith.constant dense<0.000000e+00> : vector<20x1xf32>
    %14 = tpu.matmul %13, %12, %cst_6 {dimension_numbers = #tpu.dot_dimension_numbers<[1], [0], [0], [1], [0, 0, 1, 1], [], []>} : vector<20x20xf32>, vector<20x1xf32>, vector<20x1xf32> -> vector<20x1xf32>
    %c0_7 = arith.constant 0 : index
    %c0_8 = arith.constant 0 : index
    %15 = vector.load %arg3[%c0_7, %c0_8] : memref<20x1xf32, #tpu.memory_space<vmem>>, vector<20x1xf32>
    %16 = arith.addf %14, %15 : vector<20x1xf32>
    %17 = arith.negf %16 : vector<20x1xf32>
    %18 = math.exp %17 : vector<20x1xf32>
    %cst_9 = arith.constant 1.000000e+00 : f32
    %19 = vector.broadcast %cst_9 : f32 to vector<20x1xf32>
    %20 = arith.addf %19, %18 : vector<20x1xf32>
    %21 = arith.divf %19, %20 : vector<20x1xf32>
    %22 = vector.broadcast %21 : vector<20x1xf32> to vector<20x20xf32>
    %23 = arith.mulf %22, %4 : vector<20x20xf32>
    %cst_10 = arith.constant dense<0.000000e+00> : vector<20xf32>
    %24 = vector.multi_reduction <add>, %23, %cst_10 [0] : vector<20x20xf32> to vector<20xf32>
    %25 = vector.shape_cast %24 : vector<20xf32> to vector<1x20xf32>
    %c0_11 = arith.constant 0 : index
    %c0_12 = arith.constant 0 : index
    %c0_13 = arith.constant 0 : index
    %26 = vector.load %arg10[%c0_11, %c0_12, %c0_13] : memref<2x1x20xf32, #tpu.memory_space<vmem>>, vector<1x1x20xf32>
    %27 = vector.shape_cast %26 : vector<1x1x20xf32> to vector<1x20xf32>
    %28 = vector.shape_cast %25 : vector<1x20xf32> to vector<1x1x20xf32>
    tpu.vector_store %arg10[%c0_11, %c0_12, %c0_13], %28 {strides = array<i32>} : memref<2x1x20xf32, #tpu.memory_space<vmem>>, vector<1x1x20xf32>,
    %cst_14 = arith.constant 5.000000e-01 : f32
    %29 = vector.broadcast %cst_14 : f32 to vector<1x20xf32>
    %30 = arith.cmpf oge, %25, %29 : vector<1x20xf32>
    %cst_15 = arith.constant 1.000000e+00 : f32
    %cst_16 = arith.constant 0.000000e+00 : f32
    %31 = vector.broadcast %cst_15 : f32 to vector<1x20xf32>
    %32 = vector.broadcast %cst_16 : f32 to vector<1x20xf32>
    %33 = arith.select %30, %31, %32 : vector<1x20xi1>, vector<1x20xf32>
    %c0_17 = arith.constant 0 : index
    %c0_18 = arith.constant 0 : index
    %34 = vector.load %arg4[%c0_17, %c0_18] : memref<24x20xf32, #tpu.memory_space<vmem>>, vector<24x20xf32>
    %35 = vector.broadcast %33 : vector<1x20xf32> to vector<24x20xf32>
    %36 = arith.mulf %34, %35 : vector<24x20xf32>
    %c0_19 = arith.constant 0 : index
    %c0_20 = arith.constant 0 : index
    %c0_21 = arith.constant 0 : index
    %37 = vector.load %arg1[%c0_19, %c0_20, %c0_21] : memref<2x20x256xf32, #tpu.memory_space<vmem>>, vector<1x20x256xf32>
    %38 = vector.shape_cast %37 : vector<1x20x256xf32> to vector<20x256xf32>
    %cst_22 = arith.constant dense<0.000000e+00> : vector<24x256xf32>
    %39 = tpu.matmul %36, %38, %cst_22 {dimension_numbers = #tpu.dot_dimension_numbers<[1], [0], [0], [1], [0, 0, 1, 1], [], []>} : vector<24x20xf32>, vector<20x256xf32>, vector<24x256xf32> -> vector<24x256xf32>
    %c0_23 = arith.constant 0 : index
    %c0_24 = arith.constant 0 : index
    %40 = vector.load %arg5[%c0_23, %c0_24] : memref<24x1xf32, #tpu.memory_space<vmem>>, vector<24x1xf32>
    %41 = vector.broadcast %40 : vector<24x1xf32> to vector<24x256xf32>
    %42 = arith.mulf %39, %41 : vector<24x256xf32>
    %c0_25 = arith.constant 0 : index
    %c0_26 = arith.constant 0 : index
    %43 = vector.load %arg6[%c0_25, %c0_26] : memref<24x1xf32, #tpu.memory_space<vmem>>, vector<24x1xf32>
    %44 = vector.broadcast %43 : vector<24x1xf32> to vector<24x256xf32>
    %45 = arith.addf %42, %44 : vector<24x256xf32>
    %cst_27 = arith.constant 0.000000e+00 : f32
    %46 = vector.broadcast %cst_27 : f32 to vector<24x256xf32>
    %47 = arith.maximumf %45, %46 : vector<24x256xf32>
    %c0_28 = arith.constant 0 : index
    %c0_29 = arith.constant 0 : index
    %48 = vector.load %arg7[%c0_28, %c0_29] : memref<3x24xf32, #tpu.memory_space<vmem>>, vector<3x24xf32>
    %cst_30 = arith.constant dense<0.000000e+00> : vector<3x256xf32>
    %49 = tpu.matmul %48, %47, %cst_30 {dimension_numbers = #tpu.dot_dimension_numbers<[1], [0], [0], [1], [0, 0, 1, 1], [], []>} : vector<3x24xf32>, vector<24x256xf32>, vector<3x256xf32> -> vector<3x256xf32>
    %c0_31 = arith.constant 0 : index
    %c0_32 = arith.constant 0 : index
    %50 = vector.load %arg8[%c0_31, %c0_32] : memref<3x1xf32, #tpu.memory_space<vmem>>, vector<3x1xf32>
    %51 = vector.broadcast %50 : vector<3x1xf32> to vector<3x256xf32>
    %52 = arith.addf %49, %51 : vector<3x256xf32>
    %c0_33 = arith.constant 0 : index
    %c0_34 = arith.constant 0 : index
    %c0_35 = arith.constant 0 : index
    %53 = vector.load %arg9[%c0_33, %c0_34, %c0_35] : memref<2x3x256xf32, #tpu.memory_space<vmem>>, vector<1x3x256xf32>
    %54 = vector.shape_cast %53 : vector<1x3x256xf32> to vector<3x256xf32>
    %55 = vector.shape_cast %52 : vector<3x256xf32> to vector<1x3x256xf32>
    tpu.vector_store %arg9[%c0_33, %c0_34, %c0_35], %55 {strides = array<i32>} : memref<2x3x256xf32, #tpu.memory_space<vmem>>, vector<1x3x256xf32>,
    %cst_36 = arith.constant 0.000000e+00 : f32
    %56 = vector.broadcast %cst_36 : f32 to vector<20x1xf32>
    %c1 = arith.constant 1 : index
    %c0_37 = arith.constant 0 : index
    %c0_38 = arith.constant 0 : index
    %57 = vector.load %arg1[%c1, %c0_37, %c0_38] : memref<2x20x256xf32, #tpu.memory_space<vmem>>, vector<1x20x256xf32>
    %58 = vector.shape_cast %57 : vector<1x20x256xf32> to vector<20x256xf32>
    %cst_39 = arith.constant dense<0.000000e+00> : vector<20xf32>
    %59 = vector.multi_reduction <add>, %58, %cst_39 [1] : vector<20x256xf32> to vector<20xf32>
    %60 = vector.shape_cast %59 : vector<20xf32> to vector<20x1xf32>
    %61 = arith.addf %56, %60 : vector<20x1xf32>
    %cst_40 = arith.constant 3.906250e-03 : f32
    %62 = vector.broadcast %cst_40 : f32 to vector<20x1xf32>
    %63 = arith.mulf %61, %62 : vector<20x1xf32>
    %c0_41 = arith.constant 0 : index
    %c0_42 = arith.constant 0 : index
    %64 = vector.load %arg2[%c0_41, %c0_42] : memref<20x20xf32, #tpu.memory_space<vmem>>, vector<20x20xf32>
    %cst_43 = arith.constant dense<0.000000e+00> : vector<20x1xf32>
    %65 = tpu.matmul %64, %63, %cst_43 {dimension_numbers = #tpu.dot_dimension_numbers<[1], [0], [0], [1], [0, 0, 1, 1], [], []>} : vector<20x20xf32>, vector<20x1xf32>, vector<20x1xf32> -> vector<20x1xf32>
    %c0_44 = arith.constant 0 : index
    %c0_45 = arith.constant 0 : index
    %66 = vector.load %arg3[%c0_44, %c0_45] : memref<20x1xf32, #tpu.memory_space<vmem>>, vector<20x1xf32>
    %67 = arith.addf %65, %66 : vector<20x1xf32>
    %68 = arith.negf %67 : vector<20x1xf32>
    %69 = math.exp %68 : vector<20x1xf32>
    %cst_46 = arith.constant 1.000000e+00 : f32
    %70 = vector.broadcast %cst_46 : f32 to vector<20x1xf32>
    %71 = arith.addf %70, %69 : vector<20x1xf32>
    %72 = arith.divf %70, %71 : vector<20x1xf32>
    %73 = vector.broadcast %72 : vector<20x1xf32> to vector<20x20xf32>
    %74 = arith.mulf %73, %4 : vector<20x20xf32>
    %cst_47 = arith.constant dense<0.000000e+00> : vector<20xf32>
    %75 = vector.multi_reduction <add>, %74, %cst_47 [0] : vector<20x20xf32> to vector<20xf32>
    %76 = vector.shape_cast %75 : vector<20xf32> to vector<1x20xf32>
    %c1_48 = arith.constant 1 : index
    %c0_49 = arith.constant 0 : index
    %c0_50 = arith.constant 0 : index
    %77 = vector.load %arg10[%c1_48, %c0_49, %c0_50] : memref<2x1x20xf32, #tpu.memory_space<vmem>>, vector<1x1x20xf32>
    %78 = vector.shape_cast %77 : vector<1x1x20xf32> to vector<1x20xf32>
    %79 = vector.shape_cast %76 : vector<1x20xf32> to vector<1x1x20xf32>
    tpu.vector_store %arg10[%c1_48, %c0_49, %c0_50], %79 {strides = array<i32>} : memref<2x1x20xf32, #tpu.memory_space<vmem>>, vector<1x1x20xf32>,
    %cst_51 = arith.constant 5.000000e-01 : f32
    %80 = vector.broadcast %cst_51 : f32 to vector<1x20xf32>
    %81 = arith.cmpf oge, %76, %80 : vector<1x20xf32>
    %cst_52 = arith.constant 1.000000e+00 : f32
    %cst_53 = arith.constant 0.000000e+00 : f32
    %82 = vector.broadcast %cst_52 : f32 to vector<1x20xf32>
    %83 = vector.broadcast %cst_53 : f32 to vector<1x20xf32>
    %84 = arith.select %81, %82, %83 : vector<1x20xi1>, vector<1x20xf32>
    %c0_54 = arith.constant 0 : index
    %c0_55 = arith.constant 0 : index
    %85 = vector.load %arg4[%c0_54, %c0_55] : memref<24x20xf32, #tpu.memory_space<vmem>>, vector<24x20xf32>
    %86 = vector.broadcast %84 : vector<1x20xf32> to vector<24x20xf32>
    %87 = arith.mulf %85, %86 : vector<24x20xf32>
    %c1_56 = arith.constant 1 : index
    %c0_57 = arith.constant 0 : index
    %c0_58 = arith.constant 0 : index
    %88 = vector.load %arg1[%c1_56, %c0_57, %c0_58] : memref<2x20x256xf32, #tpu.memory_space<vmem>>, vector<1x20x256xf32>
    %89 = vector.shape_cast %88 : vector<1x20x256xf32> to vector<20x256xf32>
    %cst_59 = arith.constant dense<0.000000e+00> : vector<24x256xf32>
    %90 = tpu.matmul %87, %89, %cst_59 {dimension_numbers = #tpu.dot_dimension_numbers<[1], [0], [0], [1], [0, 0, 1, 1], [], []>} : vector<24x20xf32>, vector<20x256xf32>, vector<24x256xf32> -> vector<24x256xf32>
    %c0_60 = arith.constant 0 : index
    %c0_61 = arith.constant 0 : index
    %91 = vector.load %arg5[%c0_60, %c0_61] : memref<24x1xf32, #tpu.memory_space<vmem>>, vector<24x1xf32>
    %92 = vector.broadcast %91 : vector<24x1xf32> to vector<24x256xf32>
    %93 = arith.mulf %90, %92 : vector<24x256xf32>
    %c0_62 = arith.constant 0 : index
    %c0_63 = arith.constant 0 : index
    %94 = vector.load %arg6[%c0_62, %c0_63] : memref<24x1xf32, #tpu.memory_space<vmem>>, vector<24x1xf32>
    %95 = vector.broadcast %94 : vector<24x1xf32> to vector<24x256xf32>
    %96 = arith.addf %93, %95 : vector<24x256xf32>
    %cst_64 = arith.constant 0.000000e+00 : f32
    %97 = vector.broadcast %cst_64 : f32 to vector<24x256xf32>
    %98 = arith.maximumf %96, %97 : vector<24x256xf32>
    %c0_65 = arith.constant 0 : index
    %c0_66 = arith.constant 0 : index
    %99 = vector.load %arg7[%c0_65, %c0_66] : memref<3x24xf32, #tpu.memory_space<vmem>>, vector<3x24xf32>
    %cst_67 = arith.constant dense<0.000000e+00> : vector<3x256xf32>
    %100 = tpu.matmul %99, %98, %cst_67 {dimension_numbers = #tpu.dot_dimension_numbers<[1], [0], [0], [1], [0, 0, 1, 1], [], []>} : vector<3x24xf32>, vector<24x256xf32>, vector<3x256xf32> -> vector<3x256xf32>
    %c0_68 = arith.constant 0 : index
    %c0_69 = arith.constant 0 : index
    %101 = vector.load %arg8[%c0_68, %c0_69] : memref<3x1xf32, #tpu.memory_space<vmem>>, vector<3x1xf32>
    %102 = vector.broadcast %101 : vector<3x1xf32> to vector<3x256xf32>
    %103 = arith.addf %100, %102 : vector<3x256xf32>
    %c1_70 = arith.constant 1 : index
    %c0_71 = arith.constant 0 : index
    %c0_72 = arith.constant 0 : index
    %104 = vector.load %arg9[%c1_70, %c0_71, %c0_72] : memref<2x3x256xf32, #tpu.memory_space<vmem>>, vector<1x3x256xf32>
    %105 = vector.shape_cast %104 : vector<1x3x256xf32> to vector<3x256xf32>
    %106 = vector.shape_cast %103 : vector<3x256xf32> to vector<1x3x256xf32>
    tpu.vector_store %arg9[%c1_70, %c0_71, %c0_72], %106 {strides = array<i32>} : memref<2x3x256xf32, #tpu.memory_space<vmem>>, vector<1x3x256xf32>,
    return
  }
  func.func @transform_0(%arg0: i32) -> (i32, i32, i32) {
    %c0_i32 = arith.constant 0 : i32
    %c0_i32_0 = arith.constant 0 : i32
    %c0_i32_1 = arith.constant 0 : i32
    return %arg0, %c0_i32, %c0_i32_0 : i32, i32, i32
  }
  func.func @transform_1(%arg0: i32) -> (i32, i32) {
    %c0_i32 = arith.constant 0 : i32
    %c0_i32_0 = arith.constant 0 : i32
    %c0_i32_1 = arith.constant 0 : i32
    return %c0_i32, %c0_i32_0 : i32, i32
  }
  func.func @transform_2(%arg0: i32) -> (i32, i32) {
    %c0_i32 = arith.constant 0 : i32
    %c0_i32_0 = arith.constant 0 : i32
    %c0_i32_1 = arith.constant 0 : i32
    return %c0_i32, %c0_i32_0 : i32, i32
  }
  func.func @transform_3(%arg0: i32) -> (i32, i32) {
    %c0_i32 = arith.constant 0 : i32
    %c0_i32_0 = arith.constant 0 : i32
    %c0_i32_1 = arith.constant 0 : i32
    return %c0_i32, %c0_i32_0 : i32, i32
  }
  func.func @transform_4(%arg0: i32) -> (i32, i32) {
    %c0_i32 = arith.constant 0 : i32
    %c0_i32_0 = arith.constant 0 : i32
    %c0_i32_1 = arith.constant 0 : i32
    return %c0_i32, %c0_i32_0 : i32, i32
  }
  func.func @transform_5(%arg0: i32) -> (i32, i32) {
    %c0_i32 = arith.constant 0 : i32
    %c0_i32_0 = arith.constant 0 : i32
    %c0_i32_1 = arith.constant 0 : i32
    return %c0_i32, %c0_i32_0 : i32, i32
  }
  func.func @transform_6(%arg0: i32) -> (i32, i32) {
    %c0_i32 = arith.constant 0 : i32
    %c0_i32_0 = arith.constant 0 : i32
    %c0_i32_1 = arith.constant 0 : i32
    return %c0_i32, %c0_i32_0 : i32, i32
  }
  func.func @transform_7(%arg0: i32) -> (i32, i32) {
    %c0_i32 = arith.constant 0 : i32
    %c0_i32_0 = arith.constant 0 : i32
    %c0_i32_1 = arith.constant 0 : i32
    return %c0_i32, %c0_i32_0 : i32, i32
  }
  func.func @transform_8(%arg0: i32) -> (i32, i32, i32) {
    %c0_i32 = arith.constant 0 : i32
    %c0_i32_0 = arith.constant 0 : i32
    %c0_i32_1 = arith.constant 0 : i32
    return %arg0, %c0_i32, %c0_i32_0 : i32, i32, i32
  }
  func.func @transform_9(%arg0: i32) -> (i32, i32, i32) {
    %c0_i32 = arith.constant 0 : i32
    %c0_i32_0 = arith.constant 0 : i32
    %c0_i32_1 = arith.constant 0 : i32
    return %arg0, %c0_i32, %c0_i32_0 : i32, i32, i32
  }
}

</mosaic_0001>

<bundles_post_ra>
// kernel: tpu_custom_call.1
= control target key start
LH: loop header
LB: loop body
LE: loop exit
PB: predicated region body
PF: predicated region fallthrough
CT: control target
= control target key end

     0   :  { %vm59_vm0 = vcmask 1043456   ;;  %s1417_s0 = inlined_call_operand.vmem [shape: f32[2,20,256], index: 0, kind: input, shape index: {}]   ;;  %s1418_s1 = inlined_call_operand.vmem [shape: f32[20,20], index: 1, kind: input, shape index: {}]   ;;  %s1419_s2 = inlined_call_operand.vmem [shape: f32[20,1], index: 2, kind: input, shape index: {}]   ;;  %s1420_s3 = inlined_call_operand.vmem [shape: f32[24,20], index: 3, kind: input, shape index: {}]   ;;  %s1421_s4 = inlined_call_operand.vmem [shape: f32[24,1], index: 4, kind: input, shape index: {}]   ;;  %s1422_s5 = inlined_call_operand.vmem [shape: f32[24,1], index: 5, kind: input, shape index: {}]   ;;  %s1423_s6 = inlined_call_operand.vmem [shape: f32[3,24], index: 6, kind: input, shape index: {}]   ;;  %s1424_s7 = inlined_call_operand.vmem [shape: f32[3,1], index: 7, kind: input, shape index: {}]   ;;  %s1425_s8 = inlined_call_operand.vmem [shape: f32[2,3,256], index: 8, kind: output, shape index: {0}]   ;;  %s1426_s9 = inlined_call_operand.hbm [shape: f32[2,1,20], index: 9, kind: output, shape index: {1}]  }
   0x1   :  { %v1140_v0 = vld [vmem:[%s1417_s0] sm:$0xff]  ;;  %v1145_v1 = vld [vmem:[%s1417_s0 + $0x8] sm:$0xff]  ;;  %v1150_v2 = vld [vmem:[%s1417_s0 + $0x10] sm:$0xff] }
   0x2   :  { %v53_v3 = vadd.f32 %v1145_v1, %v1140_v0  ;;  %v1157_v4 = vld [vmem:[%s1417_s0 + $0x18] sm:$0xff]  ;;  %v51_v5 = vld [vmem:[%s1417_s0 + $0x20] sm:$0xf]  ;;  %v52_v6 = vld [vmem:[%s1417_s0 + $0x28] sm:$0xf] }
   0x3   :  { %v60_v7 = vsel %vm59_vm0, %v51_v5, 0.0  ;;  %v61_v8 = vsel %vm59_vm0, %v52_v6, 0.0 }
   0x4   :  { %15 = vsyncpa [#allocation3], 0  ;;  %54 = vadd.xlane.f32.xlu0 %v53_v3  ;;  %v56_v9 = vadd.f32 %v1157_v4, %v1150_v2  ;;  %v62_v10 = vadd.f32 %v61_v8, %v60_v7  ;;  %v1080_v11 = vmov 0.0|0.0   ;;  %v1081_v12 = vmov 0.0   ;;  %v1177_v20 = vld [vmem:[%s1418_s1] sm:$0xff]  ;;  %v1187_v21 = vld [vmem:[%s1418_s1 + $0x8] sm:$0xff] }
   0x5   :  { %1001 = vmatprep.subr.bf16.mxu0 %v1080_v11  ;;  %313 = vmatprep.mubr.f32.mxu1 %v1081_v12  ;;  %vm1082_vm1 = vmmov 0   ;;  %vm77_vm2 = vcmask 162816   ;;  %v73_v22 = vld [vmem:[%s1418_s1 + $0x10] sm:$0xf]  ;;  %v1083_v23 = vmov 0   ;;  %v1201_v24 = vld [vmem:[%s1419_s2] sm:$0xff]  ;;  %v1004_v48 = vpack.c.bf16 %v1157_v4, %v1145_v1 }
   0x6   :  { %63 = vadd.xlane.f32.xlu1 %v62_v10  ;;  %977 = vmatprep.mubr.msk.f32.mxu0 %vm1082_vm1, %v1081_v12  ;;  %v1207_v28 = vld [vmem:[%s1419_s2 + $0x8] sm:$0xff]  ;;  %v76_v33 = vld [vmem:[%s1419_s2 + $0x10] sm:$0xf]  ;;  %v1006_v49 = vpack.c.bf16 %v1150_v2, %v1140_v0  ;;  %v232_v51 = vld [vmem:[%s1417_s0 + $0x20] sm:$0xf]  ;;  %v32_v63 = vlaneseq  ;;  %vm209_vm6 = vcmask 158720  }
   0x7   :  { %1030 = vset.pattern.permute.xlu1 %v1083_v23  ;;  %1031 = vset.pattern.permute.xlu0 %v1083_v23  ;;  %v233_v50 = vld [vmem:[%s1417_s0 + $0x28] sm:$0xf]  ;;  %v1227_v52 = vld [vmem:[%s1417_s0 + $0x40] sm:$0xff]  ;;  %v1241_v55 = vld [vmem:[%s1417_s0 + $0x30] sm:$0xff]  ;;  %vm218_vm7 = vcmask 155648   ;;  %vm393_vm9 = vcmask 195584  }
   0x8   :  { %57 = vadd.xlane.f32.xlu0 %v56_v9  ;;  %1005 = vmatprep.subr.bf16.mxu1 %v1004_v48  ;;  %v1232_v53 = vld [vmem:[%s1417_s0 + $0x48] sm:$0xff]  ;;  %v1246_v56 = vld [vmem:[%s1417_s0 + $0x38] sm:$0xff]  ;;  %v937_v57 = vld [vmem:[%s1417_s0 + $0x50] sm:$0xf]  ;;  %v33_v0 = vshrl.u32 %v32_v63, 7  ;;  %v37_v1 = vand.u32 127, %v32_v63 }
   0x9   :  { %1007 = vmatpush1.bf16.msra.mxu1 %v1006_v49  ;;  %v483_v54 = vadd.f32 %v1232_v53, %v1227_v52  ;;  %v938_v58 = vld [vmem:[%s1417_s0 + $0x58] sm:$0xf]  ;;  %v480_v59 = vadd.f32 %v1246_v56, %v1241_v55  ;;  %v486_v60 = vsel %vm59_vm0, %v937_v57, 0.0 }
   0xa   :  { %927 = vmatprep.subr.msk.mxu1 %vm59_vm0, %v233_v50  ;;  %v487_v61 = vsel %vm59_vm0, %v938_v58, 0.0  ;;  %v34_v2 = vadd.s32 8, %v33_v0  ;;  %vm38_vm3 = vcmp.eq.s32.totalorder %v33_v0, %v37_v1  ;;  %v35_v3 = vadd.s32 16, %v33_v0 }
   0xb   :  { %v488_v62 = vadd.f32 %v487_v61, %v486_v60  ;;  %v1259_v5 = vsel %vm38_vm3, 1.0, %v1081_v12 }
   0xc   :  { %vm39_vm4 = vcmp.eq.s32.totalorder %v34_v2, %v37_v1  ;;  %vm40_vm5 = vcmp.eq.s32.totalorder %v35_v3, %v37_v1 }
   0xd   :  { %928 = vmatpush1.msk.msra.mxu1 %vm59_vm0, %v232_v51  ;;  %v1262_v6 = vsel %vm39_vm4, 1.0, %v1081_v12  ;;  %v1267_v10 = vsel %vm40_vm5, 1.0, %v1081_v12 }
   0xe   :  { %1012 = vmatprep.subr.bf16.mxu1 %v1080_v11 }
  0x91   :  { %v55_v13 = vpop.xlane.xlu0 %54 }
  0x92   :  { %v68_v15 = vmul.f32 0.00390625, %v55_v13 }
  0x93   :  { %v64_v17 = vpop.xlane.xlu1 %63 }
  0x94   :  { %v70_v19 = vmul.f32 0.00390625, %v64_v17 }
  0x95   :  { %v58_v14 = vpop.xlane.xlu0 %57 }
  0x96   :  { %v69_v16 = vmul.f32 0.00390625, %v58_v14 }
  0x98   :  { %v1002_v18 = vpack.c.bf16 %v69_v16, %v68_v15 }
  0x9a   :  { %1003 = vmatpush3.bf16.msra.mxu0 %v1002_v18 }
  0x9b   :  { %975 = vmatprep.subr.mxu0 %v1081_v12 }
  0x9e   :  { %976 = vmatpush3.msk.msra.mxu0 %vm59_vm0, %v70_v19 }
  0x9f   :  { %978 = vmatmul.mubr.msk.f32.vlgmr.msra.gmra.mrb[0].mxu0 %vm77_vm2, %v1177_v20 }
  0xa0   :  { %980 = vmatprep.mubr.msk.f32.mxu0 %vm1082_vm1, %v1081_v12 }
  0xa3   :  { %981 = vmatmul.mubr.msk.f32.gmra.mrb[2].mxu0 %vm77_vm2, %v1187_v21 }
  0xa4   :  { %983 = vmatprep.mubr.msk.f32.mxu0 %vm1082_vm1, %v1081_v12 }
  0xa7   :  { %984 = vmatmul.mubr.msk.f32.gmra.mrb[4].mxu0 %vm77_vm2, %v73_v22 }
  0xa8   :  { %461 = vmatprep.mubr.f32.mxu0 %v1081_v12 }
 0x172   :  { %v156_v25 = vpop.f32.mrb[0].mxu0 }
 0x173   :  { %v157_v26 = vadd.f32 %v156_v25, %v1201_v24  ;;  %v979_v27 = vpop.f32.mrb[1].mxu0 }
 0x175   :  { %v924_v29 = vmul.f32 -1.442695, %v157_v26 }
 0x176   :  { %v161_v30 = vpop.f32.mrb[2].mxu0 }
 0x177   :  { %1032 = vpow2.f32 %v924_v29  ;;  %v162_v31 = vadd.f32 %v161_v30, %v1207_v28  ;;  %v982_v32 = vpop.f32.mrb[3].mxu0  ;;  %v1276_v29 = vld [vmem:[%s1420_s3] sm:$0xff] }
 0x178   :  { %v1284_v32 = vld [vmem:[%s1420_s3 + $0x8] sm:$0xff] }
 0x179   :  { %v925_v34 = vmul.f32 -1.442695, %v162_v31 }
 0x17a   :  { %v166_v35 = vpop.f32.mrb[4].mxu0 }
 0x17b   :  { %1034 = vpow2.f32 %v925_v34  ;;  %v167_v36 = vadd.f32 %v166_v35, %v76_v33  ;;  %v985_v37 = vpop.f32.mrb[5].mxu0  ;;  %v1292_v34 = vld [vmem:[%s1420_s3 + $0x10] sm:$0xff] }
 0x17d   :  { %v926_v38 = vmul.f32 -1.442695, %v167_v36 }
 0x17f   :  { %1036 = vpow2.f32 %v926_v38 }
 0x181   :  { %v1033_v39 = vpop.eup %1032 }
 0x182   :  { %v179_v40 = vadd.f32 1.0, %v1033_v39 }
 0x184   :  { %1038 = vrcp.f32 %v179_v40 }
 0x185   :  { %v1035_v41 = vpop.eup %1034 }
 0x186   :  { %v180_v42 = vadd.f32 1.0, %v1035_v41 }
 0x188   :  { %1040 = vrcp.f32 %v180_v42 }
 0x189   :  { %v1037_v43 = vpop.eup %1036 }
 0x18a   :  { %v181_v44 = vadd.f32 1.0, %v1037_v43  ;;  %v499_v43 = vld [vmem:[%s1418_s1 + $0x10] sm:$0xf]  ;;  %s1084_s1 = smov [#allocation2]  }
 0x18b   :  { %s904_s14 = sshll.u32 %s1084_s1, 4  ;;  %s905_s14 = int_to_ptr.vmem [resolvable:$true] %s904_s14 }
 0x18c   :  { %1042 = vrcp.f32 %v181_v44  ;;  %p1061_p1 = scmp.lt.s32.totalorder %s905_s14, %s905_s14 }
 0x18e   :  { %v1039_v45 = vpop.eup %1038 }
 0x18f   :  { %190 = vperm.xlu1 %1030, %v1039_v45  }
 0x192   :  { %v1041_v46 = vpop.eup %1040 }
 0x193   :  { %195 = vperm.xlu0 %1031, %v1041_v46  }
 0x196   :  { %v1043_v47 = vpop.eup %1042 }
 0x197   :  { %200 = vperm.xlu1 %1030, %v1043_v47  }
 0x1b2   :  { %484 = vadd.xlane.f32.xlu0 %v483_v54 }
 0x1bb   :  { %481 = vadd.xlane.f32.xlu1 %v480_v59  ;;  %v502_v59 = vld [vmem:[%s1419_s2 + $0x10] sm:$0xf]  ;;  %s1056_s2 = scalar_lea.vmem %s905_s14, 32 }
 0x1bc   :  { %p1057_p0 = scmp.ne.s32.totalorder %s905_s14, %s1056_s2  ;;  %p1062_p2 = scmp.lt.s32.totalorder %s1056_s2, %s1056_s2 }
 0x1be   :  { %p1063_p3 = por %p1062_p2, %p1061_p1 }
 0x1bf   :  { %489 = vadd.xlane.f32.xlu1 %v488_v62 }
 0x1c0   :  { %p1064_p4 = pnand %p1063_p3, %p1057_p0 }
 0x20e   :  { %v191_v4 = vpop.permute.xlu1 %190 }
 0x20f   :  { %v203_v8 = vmul.f32 %v1259_v5, %v191_v4 }
 0x211   :  { %v206_v14 = vsel %vm77_vm2, %v203_v8, 0.0 }
 0x212   :  { %v196_v7 = vpop.permute.xlu0 %195 }
 0x213   :  { %v204_v9 = vmul.f32 %v1262_v6, %v196_v7 }
 0x215   :  { %v207_v11 = vsel %vm77_vm2, %v204_v9, 0.0  ;;  %v332_v9 = vld [vmem:[%s1421_s4] sm:$0xff] }
 0x216   :  { %v201_v13 = vpop.permute.xlu1 %200  ;;  %v208_v16 = vadd.f32 %v207_v11, %v206_v14  ;;  %v358_v14 = vld [vmem:[%s1422_s5 + $0x10] sm:$0xff] }
 0x217   :  { %v205_v15 = vmul.f32 %v1267_v10, %v201_v13  ;;  %v333_v13 = vld [vmem:[%s1421_s4 + $0x8] sm:$0xff] }
 0x219   :  { %v210_v17 = vsel %vm209_vm6, %v205_v15, 0.0  ;;  %v356_v15 = vld [vmem:[%s1422_s5] sm:$0xff] }
 0x21a   :  { %v211_v18 = vadd.f32 %v210_v17, %v208_v16  ;;  %v357_v16 = vld [vmem:[%s1422_s5 + $0x8] sm:$0xff]  ;;  %v334_v17 = vld [vmem:[%s1421_s4 + $0x10] sm:$0xff] }
 0x21c   :  { %v212_v19 = vrot.slane %v211_v18, 4 }
 0x21e   :  { %v213_v22 = vadd.f32 %v212_v19, %v211_v18  ;;  %v811_v18 = vld [vmem:[%s1424_s7] sm:$0x7] }
 0x21f   :  { %v387_v19 = vld [vmem:[%s1424_s7] sm:$0x7] }
 0x220   :  { %v214_v23 = vrot.slane %v213_v22, 2 }
 0x222   :  { %v215_v25 = vadd.f32 %v214_v23, %v213_v22 }
 0x224   :  { %v216_v26 = vrot.slane %v215_v25, 1 }
 0x226   :  { %v217_v27 = vadd.f32 %v216_v26, %v215_v25 }
 0x228   :  { %vm220_vm8 = vcmp.ge.f32.partialorder %v217_v27, 0.5  ;;  %219 = vst.msk [vmem:[#allocation2] sm:$0x1] %vm218_vm7, %v217_v27 }
 0x229   :  { %v221_v30 = vsel %vm220_vm8, 1.0, %v1081_v12 }
 0x22a   :  { %v225_v31 = vmul.f32 %v1276_v29, %v221_v30  ;;  %v226_v33 = vmul.f32 %v1284_v32, %v221_v30  ;;  %v227_v35 = vmul.f32 %v1292_v34, %v221_v30 }
 0x22c   :  { %929 = vmatmul.mubr.msk.f32.vlgmr.msra.gmra.mrb[0].mxu1 %vm77_vm2, %v225_v31 }
 0x22d   :  { %319 = vmatprep.mubr.f32.mxu1 %v1081_v12 }
 0x230   :  { %930 = vmatmul.mubr.msk.f32.gmra.mrb[2].mxu1 %vm77_vm2, %v226_v33 }
 0x231   :  { %325 = vmatprep.mubr.f32.mxu1 %v1081_v12 }
 0x234   :  { %931 = vmatmul.mubr.msk.f32.gmra.mrb[4].mxu1 %vm77_vm2, %v227_v35 }
 0x235   :  { %992 = vmatprep.mubr.msk.f32.mxu1 %vm1082_vm1, %v1081_v12 }
 0x23f   :  { %v485_v36 = vpop.xlane.xlu0 %484 }
 0x240   :  { %v495_v37 = vmul.f32 0.00390625, %v485_v36 }
 0x248   :  { %v482_v38 = vpop.xlane.xlu1 %481 }
 0x249   :  { %v494_v39 = vmul.f32 0.00390625, %v482_v38 }
 0x24b   :  { %v1013_v40 = vpack.c.bf16 %v495_v37, %v494_v39 }
 0x24c   :  { %v490_v41 = vpop.xlane.xlu1 %489 }
 0x24d   :  { %1014 = vmatpush3.bf16.msra.mxu1 %v1013_v40  ;;  %v496_v42 = vmul.f32 0.00390625, %v490_v41 }
 0x24e   :  { %990 = vmatprep.subr.mxu1 %v1081_v12 }
 0x251   :  { %991 = vmatpush3.msk.msra.mxu1 %vm59_vm0, %v496_v42 }
 0x252   :  { %993 = vmatmul.mubr.msk.f32.vlgmr.msra.gmra.mrb[6].mxu1 %vm77_vm2, %v1177_v20 }
 0x253   :  { %995 = vmatprep.mubr.msk.f32.mxu1 %vm1082_vm1, %v1081_v12 }
 0x256   :  { %996 = vmatmul.mubr.msk.f32.gmra.mrb[8].mxu1 %vm77_vm2, %v1187_v21 }
 0x257   :  { %998 = vmatprep.mubr.msk.f32.mxu1 %vm1082_vm1, %v1081_v12 }
 0x25a   :  { %999 = vmatmul.mubr.msk.f32.gmra.mrb[10].mxu1 %vm77_vm2, %v499_v43 }
 0x25b   :  { %884 = vmatprep.mubr.f32.mxu1 %v1081_v12 }
 0x2ff   :  { %v1315_v44 = vpop.f32.mrb[0].mxu1 }
 0x300   :  { %v1317_v20 = vpop.f32.mrb[1].mxu1 }
 0x303   :  { %v1319_v45 = vpop.f32.mrb[2].mxu1 }
 0x304   :  { %v1321_v46 = vpop.f32.mrb[3].mxu1 }
 0x307   :  { %v1323_v21 = vpop.f32.mrb[4].mxu1 }
 0x308   :  { %v1325_v47 = vpop.f32.mrb[5].mxu1 }
 0x325   :  { %v581_v48 = vpop.f32.mrb[6].mxu1 }
 0x326   :  { %v582_v49 = vadd.f32 %v581_v48, %v1201_v24  ;;  %v994_v50 = vpop.f32.mrb[7].mxu1 }
 0x328   :  { %v943_v51 = vmul.f32 -1.442695, %v582_v49 }
 0x329   :  { %v586_v54 = vpop.f32.mrb[8].mxu1 }
 0x32a   :  { %1044 = vpow2.f32 %v943_v51  ;;  %v587_v57 = vadd.f32 %v586_v54, %v1207_v28  ;;  %v997_v58 = vpop.f32.mrb[9].mxu1 }
 0x32c   :  { %v944_v60 = vmul.f32 -1.442695, %v587_v57 }
 0x32d   :  { %v591_v61 = vpop.f32.mrb[10].mxu1 }
 0x32e   :  { %1046 = vpow2.f32 %v944_v60  ;;  %v592_v62 = vadd.f32 %v591_v61, %v502_v59  ;;  %v1000_v63 = vpop.f32.mrb[11].mxu1 }
 0x330   :  { %v945_v0 = vmul.f32 -1.442695, %v592_v62 }
 0x332   :  { %1048 = vpow2.f32 %v945_v0 }
 0x334   :  { %v1045_v1 = vpop.eup %1044 }
 0x335   :  { %v604_v24 = vadd.f32 1.0, %v1045_v1 }
 0x337   :  { %1050 = vrcp.f32 %v604_v24 }
 0x338   :  { %v1047_v2 = vpop.eup %1046 }
 0x339   :  { %v605_v3 = vadd.f32 1.0, %v1047_v2 }
 0x33b   :  { %1052 = vrcp.f32 %v605_v3 }
 0x33c   :  { %v1049_v4 = vpop.eup %1048 }
 0x33d   :  { %v606_v28 = vadd.f32 1.0, %v1049_v4 }
 0x33f   :  { %1054 = vrcp.f32 %v606_v28 }
 0x341   :  { %v1051_v7 = vpop.eup %1050 }
 0x342   :  { %615 = vperm.xlu1 %1030, %v1051_v7   ;;  %v1015_v7 = vpack.c.bf16 %v1232_v53, %v1246_v56 }
 0x345   :  { %v1053_v8 = vpop.eup %1052 }
 0x346   :  { %620 = vperm.xlu1 %1030, %v1053_v8   ;;  %v386_v8 = vld [vmem:[%s1423_s6] sm:$0x7] }
 0x349   :  { %v1055_v11 = vpop.eup %1054 }
 0x34a   :  { %337 = vperm.xlu1 %1030, %v332_v9   ;;  %625 = vperm.xlu0 %1031, %v1055_v11  }
 0x34e   :  { %342 = vperm.xlu1 %1030, %v333_v13   ;;  %371 = vperm.xlu0 %1031, %v358_v14  }
 0x352   :  { %361 = vperm.xlu1 %1030, %v356_v15   ;;  %766 = vperm.xlu0 %1031, %v333_v13  }
 0x356   :  { %366 = vperm.xlu1 %1030, %v357_v16   ;;  %790 = vperm.xlu0 %1031, %v357_v16  }
 0x35a   :  { %347 = vperm.xlu1 %1030, %v334_v17   ;;  %795 = vperm.xlu0 %1031, %v358_v14  }
 0x35e   :  { %761 = vperm.xlu1 %1030, %v332_v9   ;;  %814 = vperm.xlu0 %1031, %v811_v18  }
 0x362   :  { %785 = vperm.xlu1 %1030, %v356_v15  }
 0x366   :  { %771 = vperm.xlu1 %1030, %v334_v17  }
 0x36a   :  { %390 = vperm.xlu1 %1030, %v387_v19  }
 0x3c1   :  { %v616_v22 = vpop.permute.xlu1 %615 }
 0x3c2   :  { %v628_v25 = vmul.f32 %v1259_v5, %v616_v22 }
 0x3c4   :  { %v631_v33 = vsel %vm77_vm2, %v628_v25, 0.0 }
 0x3c5   :  { %v621_v23 = vpop.permute.xlu1 %620 }
 0x3c6   :  { %v629_v26 = vmul.f32 %v1262_v6, %v621_v23 }
 0x3c8   :  { %v632_v27 = vsel %vm77_vm2, %v629_v26, 0.0 }
 0x3c9   :  { %v338_v30 = vpop.permute.xlu1 %337  ;;  %v626_v31 = vpop.permute.xlu0 %625  ;;  %v633_v36 = vadd.f32 %v632_v27, %v631_v33 }
 0x3ca   :  { %v630_v35 = vmul.f32 %v1267_v10, %v626_v31  ;;  %v350_v5 = vmul.f32 %v338_v30, %v1315_v44  ;;  %v351_v6 = vmul.f32 %v338_v30, %v1317_v20 }
 0x3cc   :  { %v634_v37 = vsel %vm209_vm6, %v630_v35, 0.0 }
 0x3cd   :  { %v635_v38 = vadd.f32 %v634_v37, %v633_v36  ;;  %v343_v39 = vpop.permute.xlu1 %342 }
 0x3ce   :  { %v352_v48 = vmul.f32 %v343_v39, %v1319_v45  ;;  %v353_v49 = vmul.f32 %v343_v39, %v1321_v46  ;;  %v372_v46 = vpop.permute.xlu0 %371 }
 0x3cf   :  { %v636_v40 = vrot.slane %v635_v38, 4 }
 0x3d1   :  { %v637_v41 = vadd.f32 %v636_v40, %v635_v38  ;;  %v362_v42 = vpop.permute.xlu1 %361 }
 0x3d2   :  { %v374_v50 = vadd.f32 %v362_v42, %v350_v5  ;;  %v375_v51 = vadd.f32 %v362_v42, %v351_v6  ;;  %v767_v22 = vpop.permute.xlu0 %766 }
 0x3d3   :  { %v638_v43 = vrot.slane %v637_v41, 2 }
 0x3d4   :  { %v380_v60 = vmax.f32 %v374_v50, 0.0  ;;  %v381_v61 = vmax.f32 %v375_v51, 0.0 }
 0x3d5   :  { %v639_v10 = vadd.f32 %v638_v43, %v637_v41  ;;  %v367_v54 = vpop.permute.xlu1 %366 }
 0x3d6   :  { %v376_v57 = vadd.f32 %v367_v54, %v352_v48  ;;  %v377_v58 = vadd.f32 %v367_v54, %v353_v49  ;;  %v791_v26 = vpop.permute.xlu0 %790 }
 0x3d7   :  { %v640_v59 = vrot.slane %v639_v10, 1 }
 0x3d8   :  { %v382_v62 = vmax.f32 %v376_v57, 0.0  ;;  %v383_v63 = vmax.f32 %v377_v58, 0.0  ;;  %v810_v58 = vld [vmem:[%s1423_s6] sm:$0x7] }
 0x3d9   :  { %v641_v0 = vadd.f32 %v640_v59, %v639_v10  ;;  %v348_v44 = vpop.permute.xlu1 %347 }
 0x3da   :  { %v1010_v1 = vpack.c.bf16 %v382_v62, %v380_v60  ;;  %v354_v20 = vmul.f32 %v348_v44, %v1323_v21  ;;  %v355_v45 = vmul.f32 %v348_v44, %v1325_v47  ;;  %v1008_v24 = vpack.c.bf16 %v383_v63, %v381_v61  ;;  %v951_v47 = vld [vmem:[%s1417_s0 + $0x58] sm:$0xf]  ;;  %v796_v48 = vpop.permute.xlu0 %795 }
 0x3db   :  { %643 = vst.msk [vmem:[#allocation2 + $0x1] sm:$0x1] %vm218_vm7, %v641_v0  ;;  %v1017_v21 = vpack.c.bf16 %v1227_v52, %v1241_v55  ;;  %vm644_vm10 = vcmp.ge.f32.partialorder %v641_v0, 0.5  ;;  %v950_v52 = vld [vmem:[%s1417_s0 + $0x50] sm:$0xf] }
 0x3dc   :  { %v378_v2 = vadd.f32 %v372_v46, %v354_v20  ;;  %v379_v3 = vadd.f32 %v372_v46, %v355_v45  ;;  %1009 = vmatprep.subr.bf16.mxu0 %v1008_v24  ;;  %v645_v53 = vsel %vm644_vm10, 1.0, %v1081_v12 }
 0x3dd   :  { %1011 = vmatpush1.bf16.msra.mxu0 %v1010_v1  ;;  %v649_v55 = vmul.f32 %v645_v53, %v1276_v29  ;;  %v650_v56 = vmul.f32 %v645_v53, %v1284_v32  ;;  %v651_v9 = vmul.f32 %v645_v53, %v1292_v34  ;;  %v762_v11 = vpop.permute.xlu1 %761 }
 0x3de   :  { %v384_v4 = vmax.f32 %v378_v2, 0.0  ;;  %v385_v28 = vmax.f32 %v379_v3, 0.0 }
 0x3e0   :  { %401 = vmatprep.subr.mxu0 %v385_v28 }
 0x3e1   :  { %402 = vmatpush1.msra.mxu0 %v384_v4  ;;  %v786_v13 = vpop.permute.xlu1 %785 }
 0x3e2   :  { %932 = vmatmul.mubr.msk.f32.vlgmr.msra.gmra.mrb[6].mxu0 %vm393_vm9, %v386_v8  ;;  %1016 = vmatprep.subr.bf16.mxu0 %v1015_v7 }
 0x3e3   :  { %1018 = vmatpush1.bf16.msra.mxu0 %v1017_v21  ;;  %737 = vmatprep.mubr.f32.mxu0 %v1081_v12 }
 0x3e4   :  { %952 = vmatprep.subr.msk.mxu0 %vm59_vm0, %v951_v47 }
 0x3e5   :  { %v772_v14 = vpop.permute.xlu1 %771 }
 0x3e7   :  { %953 = vmatpush1.msk.msra.mxu0 %vm59_vm0, %v950_v52 }
 0x3e8   :  { %954 = vmatmul.mubr.msk.f32.vlgmr.msra.gmra.mrb[8].mxu0 %vm77_vm2, %v649_v55 }
 0x3e9   :  { %743 = vmatprep.mubr.f32.mxu0 %v1081_v12  ;;  %v391_v29 = vpop.permute.xlu1 %390 }
 0x3ec   :  { %955 = vmatmul.mubr.msk.f32.gmra.mrb[10].mxu0 %vm77_vm2, %v650_v56 }
 0x3ed   :  { %749 = vmatprep.mubr.f32.mxu0 %v1081_v12 }
 0x3f0   :  { %956 = vmatmul.mubr.msk.f32.gmra.mrb[12].mxu0 %vm77_vm2, %v651_v9 }
 0x4b5   :  { %v463_v15 = vpop.f32.mrb[6].mxu0 }
 0x4b6   :  { %v464_v16 = vadd.f32 %v463_v15, %v391_v29  ;;  %v465_v17 = vpop.f32.mrb[7].mxu0 }
 0x4b7   :  { %v466_v18 = vadd.f32 %v465_v17, %v391_v29 }
 0x4b9   :  { %v470_v19 = vcombine.low %v464_v16, %v466_v18 }
 0x4bb   :  { %472 = vst [vmem:[%s1425_s8] sm:$0x77] %v470_v19  ;;  %v739_v32 = vpop.f32.mrb[8].mxu0 }
 0x4bc   :  { %v774_v12 = vmul.f32 %v762_v11, %v739_v32  ;;  %v741_v23 = vpop.f32.mrb[9].mxu0 }
 0x4bd   :  { %v775_v34 = vmul.f32 %v762_v11, %v741_v23 }
 0x4be   :  { %v798_v27 = vadd.f32 %v786_v13, %v774_v12 }
 0x4bf   :  { %v745_v25 = vpop.f32.mrb[10].mxu0  ;;  %v799_v33 = vadd.f32 %v786_v13, %v775_v34 }
 0x4c0   :  { %v776_v30 = vmul.f32 %v767_v22, %v745_v25  ;;  %v747_v31 = vpop.f32.mrb[11].mxu0  ;;  %v804_v39 = vmax.f32 %v798_v27, 0.0 }
 0x4c1   :  { %v777_v35 = vmul.f32 %v767_v22, %v747_v31  ;;  %v805_v5 = vmax.f32 %v799_v33, 0.0 }
 0x4c2   :  { %v800_v36 = vadd.f32 %v791_v26, %v776_v30 }
 0x4c3   :  { %v801_v37 = vadd.f32 %v791_v26, %v777_v35  ;;  %v751_v38 = vpop.f32.mrb[12].mxu0 }
 0x4c4   :  { %v806_v40 = vmax.f32 %v800_v36, 0.0  ;;  %v778_v41 = vmul.f32 %v772_v14, %v751_v38  ;;  %v753_v42 = vpop.f32.mrb[13].mxu0 }
 0x4c5   :  { %v807_v6 = vmax.f32 %v801_v37, 0.0  ;;  %v779_v43 = vmul.f32 %v772_v14, %v753_v42 }
 0x4c6   :  { %v1021_v49 = vpack.c.bf16 %v806_v40, %v804_v39  ;;  %v802_v10 = vadd.f32 %v796_v48, %v778_v41 }
 0x4c7   :  { %v803_v50 = vadd.f32 %v796_v48, %v779_v43  ;;  %v1019_v51 = vpack.c.bf16 %v807_v6, %v805_v5 }
 0x4c8   :  { %v808_v57 = vmax.f32 %v802_v10, 0.0 }
 0x4c9   :  { %v809_v54 = vmax.f32 %v803_v50, 0.0  ;;  %1020 = vmatprep.subr.bf16.mxu1 %v1019_v51 }
 0x4ca   :  { %1022 = vmatpush1.bf16.msra.mxu1 %v1021_v49 }
 0x4cb   :  { %824 = vmatprep.subr.mxu1 %v809_v54 }
 0x4ce   :  { %825 = vmatpush1.msra.mxu1 %v808_v57 }
 0x4cf   :  { %957 = vmatmul.mubr.msk.f32.vlgmr.msra.gmra.mrb[12].mxu1 %vm393_vm9, %v810_v58 }
 0x4d0   :  { %1067 = shalt.err (!%p1064_p4)
}
 0x4d1   :  { %s1068_s17 = scalar_lea.hbm %s1426_s9, 32 }
 0x4d2   :  { %p1069_p5 = scmp.ne.s32.totalorder %s1426_s9, %s1068_s17  ;;  %p1072_p6 = scmp.lt.u32.totalorder %s1068_s17, %s1426_s9 }
 0x4d4   :  { %p1074_p7 = pnand %p1072_p6, %p1069_p5 }
 0x4d6   :  { %1077 = shalt.err (!%p1074_p7)
}
 0x4d7   :  { %s1085_s21 = smov 16   ;;  %s1086_s22 = smov 1   ;;  %v815_v59 = vpop.permute.xlu0 %814 }
 0x4d8   :  { %910 = dma.vmem_to_hbm [thread:$0]  %s905_s14, 32, %s1426_s9, [#allocation3], %s1085_s21, %s1085_s21, %s1086_s22  }
 0x5a2   :  { %v886_v60 = vpop.f32.mrb[12].mxu1 }
 0x5a3   :  { %v887_v61 = vadd.f32 %v886_v60, %v815_v59  ;;  %v888_v62 = vpop.f32.mrb[13].mxu1 }
 0x5a4   :  { %v889_v63 = vadd.f32 %v888_v62, %v815_v59 }
 0x5a6   :  { %v893_v0 = vcombine.low %v887_v61, %v889_v63 }
 0x5a8   :  { %958 = vst [vmem:[%s1425_s8 + $0x8] sm:$0x77] %v893_v0 }
 0x5a9   :  { %1078 = dma.done.wait [#allocation3], 32  }
 0x5aa   :  { %1079 = vsyncadd [#allocation3], 4294967264 }
 0x5ab   :  { %916 = vsyncpa [#allocation3], 1 }

</bundles_post_ra>
